<compile_context>
chip_gen: v7x
topology: tpu7x:2x2x1
jax: 0.10.0
libtpu: 0.0.40
codegen_flags: <defaults>
</compile_context>

<pallas_src>
import functools

import jax
import jax.numpy as jnp
from jax.experimental import pallas as pl
from jax.experimental.pallas import tpu as pltpu


def _row_stats(x):
    """Per-row stabilized stats: z = x - rowmax, lse = log(sum(exp(z)))."""
    m = jnp.max(x, axis=1, keepdims=True)
    z = x - m
    lse = jnp.log(jnp.sum(jnp.exp(z), axis=1, keepdims=True))
    return z, lse


def _write_partials(out_ref, s_a2t, s_t2a, s_a2t_ls, s_t2a_ls):
    """Place 4 scalar partial sums into lanes 0..3 of sublane 0 of the block."""
    blk = out_ref.shape                                   # (1, 8, 128)
    lane = jax.lax.broadcasted_iota(jnp.int32, blk, 2)
    sub = jax.lax.broadcasted_iota(jnp.int32, blk, 1)
    row0 = sub == 0
    vals = jnp.where(row0 & (lane == 0), s_a2t,
           jnp.where(row0 & (lane == 1), s_t2a,
           jnp.where(row0 & (lane == 2), s_a2t_ls,
           jnp.where(row0 & (lane == 3), s_t2a_ls, 0.0))))
    out_ref[...] = vals.astype(jnp.float32)


def _atc_diag_kernel(a2t_ref, t2a_ref, out_ref,
                     acc_a2t, acc_t2a, acc_a2t_ls, acc_t2a_ls,
                     *, tile_rows, tiles_per_split, n_rows, n_cols, smooth):
    """Default-targets path: one-hot diagonal targets built in-kernel."""
    s = pl.program_id(0)
    i = pl.program_id(1)
    n_inner = pl.num_programs(1)

    @pl.when(i == 0)
    def _init():
        acc_a2t[...] = jnp.zeros_like(acc_a2t)
        acc_t2a[...] = jnp.zeros_like(acc_t2a)
        if smooth:
            acc_a2t_ls[...] = jnp.zeros_like(acc_a2t_ls)
            acc_t2a_ls[...] = jnp.zeros_like(acc_t2a_ls)

    tr, n = a2t_ref.shape
    min_bn = min(n_rows, n_cols)
    row_start = (s * tiles_per_split + i) * tile_rows           # logical rows
    local_row = jax.lax.broadcasted_iota(jnp.int32, (tr, 1), 0)
    row_global = local_row + row_start                          # (tr, 1)
    valid = row_global < n_rows                                 # padded/dup rows
    tgt_row_sum = jnp.where(row_global < min_bn, 1.0, 0.0)      # fill_diagonal_

    # Diagonal one-hot built from a single-sublane (1, N) lane iota broadcast
    # against the (tr, 1) row index (no (tr, N) int32 temporary).
    col = jax.lax.broadcasted_iota(jnp.int32, (1, n), 1)
    diag_mask = col == row_global                               # (tr, n) bool
    # TODO(synk): drop the extra N-wide lane reduce by slicing the square
    # diagonal sub-block (or pushing the masked reduce onto the idle MXU)
    # once dynamic lane-dim ref slicing is validated on the target toolchain.

    def accum(x_ref, acc_tgt, acc_ls):
        z, lse = _row_stats(x_ref[...].astype(jnp.float32))
        # -sum((z - lse) * tgt, 1) == lse * sum(tgt, 1) - z[diag]
        z_diag = jnp.sum(jnp.where(diag_mask, z, 0.0), axis=1, keepdims=True)
        loss_tgt = lse * tgt_row_sum - z_diag
        acc_tgt[...] += jnp.where(valid, loss_tgt, 0.0)
        if smooth:
            # -mean(z - lse, 1) == lse - mean(z, 1)   (block spans full N)
            loss_ls = lse - jnp.mean(z, axis=1, keepdims=True)
            acc_ls[...] += jnp.where(valid, loss_ls, 0.0)

    accum(a2t_ref, acc_a2t, acc_a2t_ls)
    accum(t2a_ref, acc_t2a, acc_t2a_ls)

    @pl.when(i == n_inner - 1)
    def _finalize():
        s0 = jnp.sum(acc_a2t[...])
        s1 = jnp.sum(acc_t2a[...])
        s2 = jnp.sum(acc_a2t_ls[...]) if smooth else 0.0
        s3 = jnp.sum(acc_t2a_ls[...]) if smooth else 0.0
        _write_partials(out_ref, s0, s1, s2, s3)


def _atc_dense_kernel(a2t_ref, t2a_ref, tgt_ref, out_ref,
                      acc_a2t, acc_t2a, acc_a2t_ls, acc_t2a_ls,
                      *, tile_rows, tiles_per_split, n_rows, n_cols, smooth):
    """General path with a user-provided dense sim_targets matrix."""
    del n_cols  # block always spans the full N
    s = pl.program_id(0)
    i = pl.program_id(1)
    n_inner = pl.num_programs(1)

    @pl.when(i == 0)
    def _init():
        acc_a2t[...] = jnp.zeros_like(acc_a2t)
        acc_t2a[...] = jnp.zeros_like(acc_t2a)
        if smooth:
            acc_a2t_ls[...] = jnp.zeros_like(acc_a2t_ls)
            acc_t2a_ls[...] = jnp.zeros_like(acc_t2a_ls)

    tr, _ = a2t_ref.shape
    row_start = (s * tiles_per_split + i) * tile_rows
    row_global = jax.lax.broadcasted_iota(jnp.int32, (tr, 1), 0) + row_start
    valid = row_global < n_rows

    tgt = tgt_ref[...].astype(jnp.float32)
    tgt_row_sum = jnp.sum(tgt, axis=1, keepdims=True)

    def accum(x_ref, acc_tgt, acc_ls):
        z, lse = _row_stats(x_ref[...].astype(jnp.float32))
        loss_tgt = lse * tgt_row_sum - jnp.sum(z * tgt, axis=1, keepdims=True)
        acc_tgt[...] += jnp.where(valid, loss_tgt, 0.0)
        if smooth:
            loss_ls = lse - jnp.mean(z, axis=1, keepdims=True)
            acc_ls[...] += jnp.where(valid, loss_ls, 0.0)

    accum(a2t_ref, acc_a2t, acc_a2t_ls)
    accum(t2a_ref, acc_t2a, acc_t2a_ls)

    @pl.when(i == n_inner - 1)
    def _finalize():
        s0 = jnp.sum(acc_a2t[...])
        s1 = jnp.sum(acc_t2a[...])
        s2 = jnp.sum(acc_a2t_ls[...]) if smooth else 0.0
        s3 = jnp.sum(acc_t2a_ls[...]) if smooth else 0.0
        _write_partials(out_ref, s0, s1, s2, s3)


def _vmem_budgets():
    """(input+temporary budget, vmem_limit_bytes) chosen per TPU generation."""
    cap = None
    try:
        cap = pltpu.get_tpu_info().vmem_capacity_bytes
    except Exception:
        cap = None
    if cap is not None and cap > 96 * 1024 * 1024:
        # v5e / v6e class: 128 MiB physical VMEM -> big tiles (>= 512 rows
        # even for N in the 4k-16k range) and a raised scoped limit.
        return 56 * 1024 * 1024, 96 * 1024 * 1024
    # v7x class (64 MiB per TensorCore) or unknown: stay conservative so
    # double-buffered inputs + f32 temporaries stay well under the limit.
    return 22 * 1024 * 1024, 40 * 1024 * 1024


def _choose_tile_rows(n_rows, n_cols, per_row_input_bytes, min_itemsize,
                      budget_bytes):
    """Largest row tile whose double-buffered inputs + ~3 f32 tile-sized
    compute temporaries fit in the budget; rounded for sublane packing."""
    per_row_total = 2 * per_row_input_bytes + 3 * n_cols * 4
    t = int(budget_bytes // max(per_row_total, 1))
    mult = {4: 8, 2: 16, 1: 32}.get(int(min_itemsize), 8)
    t = max(mult, (t // mult) * mult)
    t = min(t, 1024)
    if t >= n_rows:
        return n_rows   # full-extent row block (always layout-legal)
    return t


def audio_text_contrastive_loss(sim_a2t, sim_t2a, sim_targets=None,
                                label_smooth=False, *, cast_inputs_to=None,
                                tile_rows=None, num_row_splits=2,
                                buffer_count=None):
    """JAX/Pallas equivalent of AudioTextContrastiveLoss.forward."""
    if cast_inputs_to is not None:
        # HBM-bound kernel: bf16 inputs halve read traffic; math stays f32.
        sim_a2t = sim_a2t.astype(cast_inputs_to)
        sim_t2a = sim_t2a.astype(cast_inputs_to)
        if sim_targets is not None:
            sim_targets = sim_targets.astype(cast_inputs_to)

    B, N = sim_a2t.shape
    smooth = bool(label_smooth)

    inputs = [sim_a2t, sim_t2a] + ([] if sim_targets is None else [sim_targets])
    itemsizes = [jnp.dtype(x.dtype).itemsize for x in inputs]
    per_row_bytes = N * sum(itemsizes)

    input_budget, vmem_limit = _vmem_budgets()
    if tile_rows is None:
        tile_rows = _choose_tile_rows(B, N, per_row_bytes, min(itemsizes),
                                      input_budget)
    tile_rows = min(int(tile_rows), B)

    nblocks = pl.cdiv(B, tile_rows)
    num_splits = max(1, min(int(num_row_splits), nblocks))
    tiles_per_split = pl.cdiv(nblocks, num_splits)
    grid = (num_splits, tiles_per_split)

    def sim_index_map(s, i):
        # Clamp so duplicate tail tiles of an uneven split never DMA OOB;
        # their rows are neutralized in-kernel via the `valid` select.
        return (jnp.minimum(s * tiles_per_split + i, nblocks - 1), 0)

    spec_kwargs = {}
    if buffer_count is not None:
        spec_kwargs["pipeline_mode"] = pl.Buffered(int(buffer_count))
    sim_spec = pl.BlockSpec((tile_rows, N), sim_index_map, **spec_kwargs)

    out_shape = jax.ShapeDtypeStruct((num_splits, 8, 128), jnp.float32)
    out_spec = pl.BlockSpec((1, 8, 128), lambda s, i: (s, 0, 0))

    scratch_shapes = [pltpu.VMEM((tile_rows, 1), jnp.float32)
                      for _ in range(4)]

    compiler_params = pltpu.CompilerParams(
        dimension_semantics=("parallel", "arbitrary"),
        vmem_limit_bytes=vmem_limit,
    )

    common = dict(tile_rows=tile_rows, tiles_per_split=tiles_per_split,
                  n_rows=B, n_cols=N, smooth=smooth)
    if sim_targets is None:
        kernel = functools.partial(_atc_diag_kernel, **common)
        in_specs = [sim_spec, sim_spec]
        operands = (sim_a2t, sim_t2a)
    else:
        kernel = functools.partial(_atc_dense_kernel, **common)
        in_specs = [sim_spec, sim_spec, sim_spec]
        operands = (sim_a2t, sim_t2a, sim_targets)

    parts = pl.pallas_call(
        kernel,
        grid=grid,
        out_shape=out_shape,
        in_specs=in_specs,
        out_specs=out_spec,
        scratch_shapes=scratch_shapes,
        compiler_params=compiler_params,
    )(*operands)

    sums = jnp.sum(parts[:, 0, :4], axis=0)       # combine per-split partials
    inv_b = 1.0 / B
    loss_a2t = sums[0] * inv_b
    loss_t2a = sums[1] * inv_b
    loss_atc = 0.5 * (loss_a2t + loss_t2a)
    if smooth:
        loss_atc = 0.9 * loss_atc + 0.1 * 0.5 * (sums[2] + sums[3]) * inv_b
    return loss_atc


def _reference(sim_a2t, sim_t2a, sim_targets=None, label_smooth=False):
    """Pure-JAX reference for correctness checking."""
    B, N = sim_a2t.shape
    if sim_targets is None:
        sim_targets = jnp.zeros((B, N), jnp.float32)
        d = jnp.arange(min(B, N))
        sim_targets = sim_targets.at[d, d].set(1.0)
    ls_a2t = jax.nn.log_softmax(sim_a2t.astype(jnp.float32), axis=1)
    ls_t2a = jax.nn.log_softmax(sim_t2a.astype(jnp.float32), axis=1)
    loss_a2t = -jnp.mean(jnp.sum(ls_a2t * sim_targets, axis=1))
    loss_t2a = -jnp.mean(jnp.sum(ls_t2a * sim_targets, axis=1))
    loss = (loss_a2t + loss_t2a) / 2.0
    if label_smooth:
        la = -jnp.mean(jnp.mean(ls_a2t, axis=1))
        lt = -jnp.mean(jnp.mean(ls_t2a, axis=1))
        loss = 0.9 * loss + 0.1 * (la + lt) / 2.0
    return loss


if __name__ == "__main__":
    key = jax.random.PRNGKey(0)
    k1, k2, k3, k4, k5, k6 = jax.random.split(key, 6)

    # 1) square batch, default diagonal targets (targets built in-kernel)
    B = 8
    a = jax.random.normal(k1, (B, B), jnp.float32)
    t = jax.random.normal(k2, (B, B), jnp.float32)
    out = jax.block_until_ready(audio_text_contrastive_loss(a, t))
    ref = jax.block_until_ready(_reference(a, t))
    assert jnp.allclose(out, ref, rtol=1e-5, atol=1e-5), (out, ref)

    # 2) label smoothing on
    out = jax.block_until_ready(
        audio_text_contrastive_loss(a, t, label_smooth=True))
    ref = jax.block_until_ready(_reference(a, t, label_smooth=True))
    assert jnp.allclose(out, ref, rtol=1e-5, atol=1e-5), (out, ref)

    # 3) rectangular (B > N), default diagonal targets (min(B, N) diagonal)
    a2 = jax.random.normal(k3, (12, 8), jnp.float32)
    t2 = jax.random.normal(k4, (12, 8), jnp.float32)
    out = jax.block_until_ready(audio_text_contrastive_loss(a2, t2))
    ref = jax.block_until_ready(_reference(a2, t2))
    assert jnp.allclose(out, ref, rtol=1e-5, atol=1e-5), (out, ref)

    # 4) dense soft targets + multi-tile grid + 2-way split with a clamped
    #    duplicate tail tile and a masked partial last real tile
    B3, N3 = 20, 24
    a3 = jax.random.normal(k5, (B3, N3), jnp.float32)
    t3 = jax.random.normal(k6, (B3, N3), jnp.float32)
    raw = jax.random.uniform(k2, (B3, N3), jnp.float32) + 0.1
    tgt3 = raw / jnp.sum(raw, axis=1, keepdims=True)
    out = jax.block_until_ready(
        audio_text_contrastive_loss(a3, t3, sim_targets=tgt3,
                                    label_smooth=True, tile_rows=8,
                                    num_row_splits=2))
    ref = jax.block_until_ready(
        _reference(a3, t3, sim_targets=tgt3, label_smooth=True))
    assert jnp.allclose(out, ref, rtol=1e-5, atol=1e-5), (out, ref)

    # 5) diagonal targets, multi-tile, 2-way (megacore-style) split
    B4 = 32
    a4 = jax.random.normal(k3, (B4, B4), jnp.float32)
    t4 = jax.random.normal(k4, (B4, B4), jnp.float32)
    out = jax.block_until_ready(
        audio_text_contrastive_loss(a4, t4, label_smooth=True,
                                    tile_rows=8, num_row_splits=2))
    ref = jax.block_until_ready(_reference(a4, t4, label_smooth=True))
    assert jnp.allclose(out, ref, rtol=1e-5, atol=1e-5), (out, ref)

    # 6) bf16 input path (halved HBM traffic) — relaxed tolerance vs f32 ref
    out = jax.block_until_ready(
        audio_text_contrastive_loss(a, t, cast_inputs_to=jnp.bfloat16))
    ref = jax.block_until_ready(_reference(a, t))
    assert jnp.allclose(out, ref, rtol=5e-2, atol=5e-2), (out, ref)

    print("KERNEL_OK")
</pallas_src>

<mosaic_0001>
module attributes {stable_mosaic.version = 11 : i64} {
  func.func @_atc_diag_kernel(%arg0: i32, %arg1: i32, %arg2: memref<8x8xf32, #tpu.memory_space<vmem>>, %arg3: memref<8x8xf32, #tpu.memory_space<vmem>>, %arg4: memref<1x8x128xf32, #tpu.memory_space<vmem>>, %arg5: memref<8x1xf32, #tpu.memory_space<vmem>>, %arg6: memref<8x1xf32, #tpu.memory_space<vmem>>, %arg7: memref<8x1xf32, #tpu.memory_space<vmem>>, %arg8: memref<8x1xf32, #tpu.memory_space<vmem>>) attributes {dimension_semantics = [#tpu.dimension_semantics<parallel>, #tpu.dimension_semantics<arbitrary>], iteration_bounds = array<i64: 1, 1>, scalar_prefetch = 0 : i64, scratch_operands = 4 : i64, tpu.core_type = #tpu.core_type<tc>, window_params = [{transform_indices = @transform_0, window_bounds = array<i64: 8, 8>}, {transform_indices = @transform_1, window_bounds = array<i64: 8, 8>}, {transform_indices = @transform_2, window_bounds = array<i64: 1, 8, 128>}]} {
    %c0_i32 = arith.constant 0 : i32
    %0 = arith.cmpi eq, %arg1, %c0_i32 : i32
    %1 = arith.extui %0 : i1 to i32
    %c0_i32_0 = arith.constant 0 : i32
    %2 = arith.cmpi ne, %1, %c0_i32_0 : i32
    scf.if %2 {
      %cst_27 = arith.constant 0.000000e+00 : f32
      %63 = vector.broadcast %cst_27 : f32 to vector<8x1xf32>
      %c0_28 = arith.constant 0 : index
      %c0_29 = arith.constant 0 : index
      %64 = vector.load %arg5[%c0_28, %c0_29] : memref<8x1xf32, #tpu.memory_space<vmem>>, vector<8x1xf32>
      tpu.vector_store %arg5[%c0_28, %c0_29], %63 {strides = array<i32>} : memref<8x1xf32, #tpu.memory_space<vmem>>, vector<8x1xf32>,
      %cst_30 = arith.constant 0.000000e+00 : f32
      %65 = vector.broadcast %cst_30 : f32 to vector<8x1xf32>
      %c0_31 = arith.constant 0 : index
      %c0_32 = arith.constant 0 : index
      %66 = vector.load %arg6[%c0_31, %c0_32] : memref<8x1xf32, #tpu.memory_space<vmem>>, vector<8x1xf32>
      tpu.vector_store %arg6[%c0_31, %c0_32], %65 {strides = array<i32>} : memref<8x1xf32, #tpu.memory_space<vmem>>, vector<8x1xf32>,
    } else {
    }
    %c1_i32 = arith.constant 1 : i32
    %3 = arith.muli %arg0, %c1_i32 : i32
    %4 = arith.addi %3, %arg1 : i32
    %c8_i32 = arith.constant 8 : i32
    %5 = arith.muli %4, %c8_i32 : i32
    %6 = tpu.iota {dimensions = array<i32: 0>} : vector<8x1xi32>
    %7 = vector.broadcast %5 : i32 to vector<8x1xi32>
    %8 = arith.addi %6, %7 : vector<8x1xi32>
    %c8_i32_1 = arith.constant 8 : i32
    %9 = vector.broadcast %c8_i32_1 : i32 to vector<8x1xi32>
    %10 = arith.cmpi slt, %8, %9 : vector<8x1xi32>
    %c8_i32_2 = arith.constant 8 : i32
    %11 = vector.broadcast %c8_i32_2 : i32 to vector<8x1xi32>
    %12 = arith.cmpi slt, %8, %11 : vector<8x1xi32>
    %cst = arith.constant 1.000000e+00 : f32
    %cst_3 = arith.constant 0.000000e+00 : f32
    %13 = vector.broadcast %cst : f32 to vector<8x1xf32>
    %14 = vector.broadcast %cst_3 : f32 to vector<8x1xf32>
    %15 = arith.select %12, %13, %14 : vector<8x1xi1>, vector<8x1xf32>
    %16 = tpu.iota {dimensions = array<i32: 1>} : vector<1x8xi32>
    %17 = vector.broadcast %16 : vector<1x8xi32> to vector<8x8xi32>
    %18 = vector.broadcast %8 : vector<8x1xi32> to vector<8x8xi32>
    %19 = arith.cmpi eq, %17, %18 : vector<8x8xi32>
    %c0 = arith.constant 0 : index
    %c0_4 = arith.constant 0 : index
    %20 = vector.load %arg2[%c0, %c0_4] : memref<8x8xf32, #tpu.memory_space<vmem>>, vector<8x8xf32>
    %cst_5 = arith.constant dense<0xFF800000> : vector<8xf32>
    %21 = vector.multi_reduction <maximumf>, %20, %cst_5 [1] : vector<8x8xf32> to vector<8xf32>
    %22 = vector.shape_cast %21 : vector<8xf32> to vector<8x1xf32>
    %23 = vector.broadcast %22 : vector<8x1xf32> to vector<8x8xf32>
    %24 = arith.subf %20, %23 : vector<8x8xf32>
    %25 = math.exp %24 : vector<8x8xf32>
    %cst_6 = arith.constant dense<0.000000e+00> : vector<8xf32>
    %26 = vector.multi_reduction <add>, %25, %cst_6 [1] : vector<8x8xf32> to vector<8xf32>
    %27 = vector.shape_cast %26 : vector<8xf32> to vector<8x1xf32>
    %28 = math.log %27 : vector<8x1xf32>
    %cst_7 = arith.constant 0.000000e+00 : f32
    %29 = vector.broadcast %cst_7 : f32 to vector<8x8xf32>
    %30 = arith.select %19, %24, %29 : vector<8x8xi1>, vector<8x8xf32>
    %cst_8 = arith.constant dense<0.000000e+00> : vector<8xf32>
    %31 = vector.multi_reduction <add>, %30, %cst_8 [1] : vector<8x8xf32> to vector<8xf32>
    %32 = vector.shape_cast %31 : vector<8xf32> to vector<8x1xf32>
    %33 = arith.mulf %28, %15 : vector<8x1xf32>
    %34 = arith.subf %33, %32 : vector<8x1xf32>
    %c0_9 = arith.constant 0 : index
    %c0_10 = arith.constant 0 : index
    %35 = vector.load %arg5[%c0_9, %c0_10] : memref<8x1xf32, #tpu.memory_space<vmem>>, vector<8x1xf32>
    %cst_11 = arith.constant 0.000000e+00 : f32
    %36 = vector.broadcast %cst_11 : f32 to vector<8x1xf32>
    %37 = arith.select %10, %34, %36 : vector<8x1xi1>, vector<8x1xf32>
    %38 = arith.addf %35, %37 : vector<8x1xf32>
    %c0_12 = arith.constant 0 : index
    %c0_13 = arith.constant 0 : index
    %39 = vector.load %arg5[%c0_12, %c0_13] : memref<8x1xf32, #tpu.memory_space<vmem>>, vector<8x1xf32>
    tpu.vector_store %arg5[%c0_12, %c0_13], %38 {strides = array<i32>} : memref<8x1xf32, #tpu.memory_space<vmem>>, vector<8x1xf32>,
    %c0_14 = arith.constant 0 : index
    %c0_15 = arith.constant 0 : index
    %40 = vector.load %arg3[%c0_14, %c0_15] : memref<8x8xf32, #tpu.memory_space<vmem>>, vector<8x8xf32>
    %cst_16 = arith.constant dense<0xFF800000> : vector<8xf32>
    %41 = vector.multi_reduction <maximumf>, %40, %cst_16 [1] : vector<8x8xf32> to vector<8xf32>
    %42 = vector.shape_cast %41 : vector<8xf32> to vector<8x1xf32>
    %43 = vector.broadcast %42 : vector<8x1xf32> to vector<8x8xf32>
    %44 = arith.subf %40, %43 : vector<8x8xf32>
    %45 = math.exp %44 : vector<8x8xf32>
    %cst_17 = arith.constant dense<0.000000e+00> : vector<8xf32>
    %46 = vector.multi_reduction <add>, %45, %cst_17 [1] : vector<8x8xf32> to vector<8xf32>
    %47 = vector.shape_cast %46 : vector<8xf32> to vector<8x1xf32>
    %48 = math.log %47 : vector<8x1xf32>
    %cst_18 = arith.constant 0.000000e+00 : f32
    %49 = vector.broadcast %cst_18 : f32 to vector<8x8xf32>
    %50 = arith.select %19, %44, %49 : vector<8x8xi1>, vector<8x8xf32>
    %cst_19 = arith.constant dense<0.000000e+00> : vector<8xf32>
    %51 = vector.multi_reduction <add>, %50, %cst_19 [1] : vector<8x8xf32> to vector<8xf32>
    %52 = vector.shape_cast %51 : vector<8xf32> to vector<8x1xf32>
    %53 = arith.mulf %48, %15 : vector<8x1xf32>
    %54 = arith.subf %53, %52 : vector<8x1xf32>
    %c0_20 = arith.constant 0 : index
    %c0_21 = arith.constant 0 : index
    %55 = vector.load %arg6[%c0_20, %c0_21] : memref<8x1xf32, #tpu.memory_space<vmem>>, vector<8x1xf32>
    %cst_22 = arith.constant 0.000000e+00 : f32
    %56 = vector.broadcast %cst_22 : f32 to vector<8x1xf32>
    %57 = arith.select %10, %54, %56 : vector<8x1xi1>, vector<8x1xf32>
    %58 = arith.addf %55, %57 : vector<8x1xf32>
    %c0_23 = arith.constant 0 : index
    %c0_24 = arith.constant 0 : index
    %59 = vector.load %arg6[%c0_23, %c0_24] : memref<8x1xf32, #tpu.memory_space<vmem>>, vector<8x1xf32>
    tpu.vector_store %arg6[%c0_23, %c0_24], %58 {strides = array<i32>} : memref<8x1xf32, #tpu.memory_space<vmem>>, vector<8x1xf32>,
    %c0_i32_25 = arith.constant 0 : i32
    %60 = arith.cmpi eq, %arg1, %c0_i32_25 : i32
    %61 = arith.extui %60 : i1 to i32
    %c0_i32_26 = arith.constant 0 : i32
    %62 = arith.cmpi ne, %61, %c0_i32_26 : i32
    scf.if %62 {
      %c0_27 = arith.constant 0 : index
      %c0_28 = arith.constant 0 : index
      %63 = vector.load %arg5[%c0_27, %c0_28] : memref<8x1xf32, #tpu.memory_space<vmem>>, vector<8x1xf32>
      %64 = vector.shape_cast %63 : vector<8x1xf32> to vector<1x8x1xf32>
      %cst_29 = arith.constant dense<0.000000e+00> : vector<1xf32>
      %65 = vector.multi_reduction <add>, %64, %cst_29 [1, 2] : vector<1x8x1xf32> to vector<1xf32>
      %66 = vector.shape_cast %65 : vector<1xf32> to vector<1x1x1xf32>
      %67 = vector.extract %66[0, 0, 0] : f32 from vector<1x1x1xf32>
      %c0_30 = arith.constant 0 : index
      %c0_31 = arith.constant 0 : index
      %68 = vector.load %arg6[%c0_30, %c0_31] : memref<8x1xf32, #tpu.memory_space<vmem>>, vector<8x1xf32>
      %69 = vector.shape_cast %68 : vector<8x1xf32> to vector<1x8x1xf32>
      %cst_32 = arith.constant dense<0.000000e+00> : vector<1xf32>
      %70 = vector.multi_reduction <add>, %69, %cst_32 [1, 2] : vector<1x8x1xf32> to vector<1xf32>
      %71 = vector.shape_cast %70 : vector<1xf32> to vector<1x1x1xf32>
      %72 = vector.extract %71[0, 0, 0] : f32 from vector<1x1x1xf32>
      %73 = tpu.iota {dimensions = array<i32: 2>} : vector<1x8x128xi32>
      %74 = tpu.iota {dimensions = array<i32: 1>} : vector<1x8x128xi32>
      %c0_i32_33 = arith.constant 0 : i32
      %75 = vector.broadcast %c0_i32_33 : i32 to vector<1x8x128xi32>
      %76 = arith.cmpi eq, %74, %75 : vector<1x8x128xi32>
      %c0_i32_34 = arith.constant 0 : i32
      %77 = vector.broadcast %c0_i32_34 : i32 to vector<1x8x128xi32>
      %78 = arith.cmpi eq, %73, %77 : vector<1x8x128xi32>
      %79 = arith.andi %76, %78 : vector<1x8x128xi1>
      %c1_i32_35 = arith.constant 1 : i32
      %80 = vector.broadcast %c1_i32_35 : i32 to vector<1x8x128xi32>
      %81 = arith.cmpi eq, %73, %80 : vector<1x8x128xi32>
      %82 = arith.andi %76, %81 : vector<1x8x128xi1>
      %c2_i32 = arith.constant 2 : i32
      %83 = vector.broadcast %c2_i32 : i32 to vector<1x8x128xi32>
      %84 = arith.cmpi eq, %73, %83 : vector<1x8x128xi32>
      %85 = arith.andi %76, %84 : vector<1x8x128xi1>
      %c3_i32 = arith.constant 3 : i32
      %86 = vector.broadcast %c3_i32 : i32 to vector<1x8x128xi32>
      %87 = arith.cmpi eq, %73, %86 : vector<1x8x128xi32>
      %88 = arith.andi %76, %87 : vector<1x8x128xi1>
      %cst_36 = arith.constant 0.000000e+00 : f32
      %cst_37 = arith.constant 0.000000e+00 : f32
      %89 = vector.broadcast %cst_36 : f32 to vector<1x8x128xf32>
      %90 = vector.broadcast %cst_37 : f32 to vector<1x8x128xf32>
      %91 = arith.select %88, %89, %90 : vector<1x8x128xi1>, vector<1x8x128xf32>
      %cst_38 = arith.constant 0.000000e+00 : f32
      %92 = vector.broadcast %cst_38 : f32 to vector<1x8x128xf32>
      %93 = arith.select %85, %92, %91 : vector<1x8x128xi1>, vector<1x8x128xf32>
      %94 = vector.broadcast %72 : f32 to vector<1x8x128xf32>
      %95 = arith.select %82, %94, %93 : vector<1x8x128xi1>, vector<1x8x128xf32>
      %96 = vector.broadcast %67 : f32 to vector<1x8x128xf32>
      %97 = arith.select %79, %96, %95 : vector<1x8x128xi1>, vector<1x8x128xf32>
      %c0_39 = arith.constant 0 : index
      %c0_40 = arith.constant 0 : index
      %c0_41 = arith.constant 0 : index
      %98 = vector.load %arg4[%c0_39, %c0_40, %c0_41] : memref<1x8x128xf32, #tpu.memory_space<vmem>>, vector<1x8x128xf32>
      tpu.vector_store %arg4[%c0_39, %c0_40, %c0_41], %97 {strides = array<i32>} : memref<1x8x128xf32, #tpu.memory_space<vmem>>, vector<1x8x128xf32>,
    } else {
    }
    return
  }
  func.func @transform_0(%arg0: i32, %arg1: i32) -> (i32, i32) {
    %c1_i32 = arith.constant 1 : i32
    %0 = arith.muli %arg0, %c1_i32 : i32
    %1 = arith.addi %0, %arg1 : i32
    %c0_i32 = arith.constant 0 : i32
    %2 = arith.minsi %1, %c0_i32 : i32
    %c0_i32_0 = arith.constant 0 : i32
    %c0_i32_1 = arith.constant 0 : i32
    return %2, %c0_i32_0 : i32, i32
  }
  func.func @transform_1(%arg0: i32, %arg1: i32) -> (i32, i32) {
    %c1_i32 = arith.constant 1 : i32
    %0 = arith.muli %arg0, %c1_i32 : i32
    %1 = arith.addi %0, %arg1 : i32
    %c0_i32 = arith.constant 0 : i32
    %2 = arith.minsi %1, %c0_i32 : i32
    %c0_i32_0 = arith.constant 0 : i32
    %c0_i32_1 = arith.constant 0 : i32
    return %2, %c0_i32_0 : i32, i32
  }
  func.func @transform_2(%arg0: i32, %arg1: i32) -> (i32, i32, i32) {
    %c0_i32 = arith.constant 0 : i32
    %c0_i32_0 = arith.constant 0 : i32
    %c0_i32_1 = arith.constant 0 : i32
    return %arg0, %c0_i32, %c0_i32_0 : i32, i32, i32
  }
}

</mosaic_0001>

<bundles_post_ra>
// kernel: tpu_custom_call.1
= control target key start
LH: loop header
LB: loop body
LE: loop exit
PB: predicated region body
PF: predicated region fallthrough
CT: control target
= control target key end

     0   :  { %7 = vsyncpa [#allocation7], 0  ;;  %s341_s0 = inlined_call_operand.hbm [shape: f32[8,8], index: 0, kind: input, shape index: {}]   ;;  %s342_s1 = inlined_call_operand.hbm [shape: f32[8,8], index: 1, kind: input, shape index: {}]   ;;  %s343_s2 = inlined_call_operand.hbm [shape: f32[1,8,128], index: 2, kind: output, shape index: {}]  }
   0x1   :  { %8 = vsyncpa [#allocation10], 0 }
   0x2   :  { %9 = vsyncpa [#allocation8], 0  ;;  %s259_s9 = smov [#allocation6]   ;;  %s260_s11 = smov [#allocation9]  }
   0x3   :  { %s21_s10 = sshll.u32 %s259_s9, 4  ;;  %s36_s12 = sshll.u32 %s260_s11, 4  ;;  %s22_s10 = int_to_ptr.vmem [resolvable:$true] %s21_s10  ;;  %s37_s12 = int_to_ptr.vmem [resolvable:$true] %s36_s12 }
   0x4   :  { %s187_s15 = scalar_lea.hbm %s341_s0, 128 }
   0x5   :  { %p188_p0 = scmp.ne.s32.totalorder %s341_s0, %s187_s15  ;;  %p191_p1 = scmp.lt.u32.totalorder %s187_s15, %s341_s0 }
   0x7   :  { %p193_p2 = pnand %p191_p1, %p188_p0 }
   0x9   :  { %196 = shalt.err (!%p193_p2)
}
   0xa   :  { %s197_s20 = scalar_lea.vmem %s22_s10, 128  ;;  %p202_p4 = scmp.lt.s32.totalorder %s22_s10, %s22_s10 }
   0xb   :  { %p198_p3 = scmp.ne.s32.totalorder %s22_s10, %s197_s20  ;;  %p203_p5 = scmp.lt.s32.totalorder %s197_s20, %s197_s20 }
   0xd   :  { %p204_p6 = por %p203_p5, %p202_p4 }
   0xf   :  { %p205_p7 = pnand %p204_p6, %p198_p3 }
  0x11   :  { %208 = shalt.err (!%p205_p7)
}
  0x12   :  { %24 = dma.hbm_to_vmem [thread:$0]  %s341_s0, 128, %s22_s10, [#allocation7]  }
  0x13   :  { %s209_s25 = scalar_lea.hbm %s342_s1, 128 }
  0x14   :  { %p210_p8 = scmp.ne.s32.totalorder %s342_s1, %s209_s25  ;;  %p213_p9 = scmp.lt.u32.totalorder %s209_s25, %s342_s1 }
  0x16   :  { %p215_p10 = pnand %p213_p9, %p210_p8 }
  0x18   :  { %218 = shalt.err (!%p215_p10)
}
  0x19   :  { %s219_s30 = scalar_lea.vmem %s37_s12, 128  ;;  %p224_p12 = scmp.lt.s32.totalorder %s37_s12, %s37_s12 }
  0x1a   :  { %p220_p11 = scmp.ne.s32.totalorder %s37_s12, %s219_s30  ;;  %p225_p13 = scmp.lt.s32.totalorder %s219_s30, %s219_s30 }
  0x1c   :  { %p226_p0 = por %p225_p13, %p224_p12 }
  0x1e   :  { %p227_p1 = pnand %p226_p0, %p220_p11 }
  0x20   :  { %230 = shalt.err (!%p227_p1)
}
  0x21   :  { %39 = dma.hbm_to_vmem [thread:$0]  %s342_s1, 128, %s37_s12, [#allocation10]  }
  0x22   :  { %253 = dma.done.wait [#allocation7], 128  }
  0x23   :  { %254 = vsyncadd [#allocation7], 4294967168 }
  0x24   :  { %255 = dma.done.wait [#allocation10], 128  }
  0x25   :  { %256 = vsyncadd [#allocation10], 4294967168  ;;  %vm71_vm0 = vcmask 64512   ;;  %v70_v0 = vld [vmem:[#allocation6] sm:$0xff]  ;;  %v94_v1 = vld [vmem:[#allocation9] sm:$0xff]  ;;  %v61_v4 = vlaneseq  ;;  %vm56_vm2 = vcmask 7168  }
  0x26   :  { %v72_v2 = vsel %vm71_vm0, %v70_v0, -inf  ;;  %v95_v3 = vsel %vm71_vm0, %v94_v1, -inf  ;;  %v261_v18 = vmov 0.0   ;;  %s262_s4 = smov [#allocation11]  }
  0x27   :  { %73 = vmax.xlane.f32.xlu0 %v72_v2  ;;  %v304_v5 = vshrl.u32 %v61_v4, 7  ;;  %v306_v6 = vand.u32 127, %v61_v4  ;;  %57 = vst.msk [vmem:[#allocation2] sm:$0xff] %vm56_vm2, %v261_v18  ;;  %58 = vst.msk [vmem:[#allocation3] sm:$0xff] %vm56_vm2, %v261_v18  ;;  %s157_s5 = sshll.u32 %s262_s4, 4  ;;  %s158_s5 = int_to_ptr.vmem [resolvable:$true] %s157_s5 }
  0x28   :  { %s231_s7 = scalar_lea.vmem %s158_s5, 128  ;;  %p236_p3 = scmp.lt.s32.totalorder %s158_s5, %s158_s5 }
  0x29   :  { %vm69_vm1 = vcmp.eq.s32.totalorder %v306_v6, %v304_v5  ;;  %vm141_vm3 = vcmp.eq.s32.totalorder %v304_v5, 0  ;;  %vm144_vm4 = vcmp.eq.s32.totalorder %v306_v6, 1  ;;  %vm142_vm5 = vcmp.eq.s32.totalorder %v306_v6, 0  ;;  %p232_p2 = scmp.ne.s32.totalorder %s158_s5, %s231_s7  ;;  %p237_p4 = scmp.lt.s32.totalorder %s231_s7, %s231_s7 }
  0x2a   :  { %vm145_vm6 = vmand %vm141_vm3, %vm144_vm4 }
  0x2b   :  { %96 = vmax.xlane.f32.xlu0 %v95_v3  ;;  %vm143_vm7 = vmand %vm141_vm3, %vm142_vm5  ;;  %p238_p5 = por %p237_p4, %p236_p3 }
  0x2d   :  { %p239_p6 = pnand %p238_p5, %p232_p2 }
  0x2e   :  { %v89_v27 = vld [vmem:[#allocation2] sm:$0xff]  ;;  %v112_v33 = vld [vmem:[#allocation3] sm:$0xff] }
  0xb4   :  { %v74_v7 = vpop.xlane.xlu0 %73 }
  0xb5   :  { %v75_v8 = vsub.f32 %v70_v0, %v74_v7 }
  0xb7   :  { %v76_v9 = vmul.f32 1.442695, %v75_v8  ;;  %v83_v10 = vsel %vm69_vm1, %v75_v8, 0.0 }
  0xb8   :  { %v97_v11 = vpop.xlane.xlu0 %96  ;;  %v84_v12 = vsel %vm71_vm0, %v83_v10, 0.0 }
  0xb9   :  { %179 = vpow2.f32 %v76_v9  ;;  %v98_v13 = vsub.f32 %v94_v1, %v97_v11  ;;  %85 = vadd.xlane.f32.xlu0 %v84_v12 }
  0xbb   :  { %v99_v14 = vmul.f32 1.442695, %v98_v13  ;;  %v106_v20 = vsel %vm69_vm1, %v98_v13, 0.0 }
  0xbc   :  { %v107_v21 = vsel %vm71_vm0, %v106_v20, 0.0 }
  0xbd   :  { %181 = vpow2.f32 %v99_v14 }
  0xc3   :  { %v180_v15 = vpop.eup %179 }
  0xc4   :  { %v78_v16 = vsel %vm71_vm0, %v180_v15, 0.0 }
  0xc5   :  { %79 = vadd.xlane.f32.xlu1 %v78_v16 }
  0xc7   :  { %v182_v17 = vpop.eup %181 }
  0xc8   :  { %v101_v19 = vsel %vm71_vm0, %v182_v17, 0.0 }
  0xc9   :  { %102 = vadd.xlane.f32.xlu1 %v101_v19 }
  0xcd   :  { %108 = vadd.xlane.f32.xlu1 %v107_v21 }
 0x146   :  { %v86_v26 = vpop.xlane.xlu0 %85 }
 0x152   :  { %v80_v22 = vpop.xlane.xlu1 %79 }
 0x153   :  { %183 = vlog2.f32 %v80_v22 }
 0x156   :  { %v103_v23 = vpop.xlane.xlu1 %102 }
 0x157   :  { %185 = vlog2.f32 %v103_v23 }
 0x15a   :  { %v109_v32 = vpop.xlane.xlu1 %108 }
 0x15d   :  { %v184_v24 = vpop.eup %183 }
 0x15e   :  { %v82_v25 = vmul.f32 0.6931472, %v184_v24 }
 0x160   :  { %v88_v28 = vsub.f32 %v82_v25, %v86_v26 }
 0x161   :  { %v186_v29 = vpop.eup %185 }
 0x162   :  { %v91_v30 = vadd.f32 %v89_v27, %v88_v28  ;;  %v105_v31 = vmul.f32 0.6931472, %v186_v29 }
 0x164   :  { %93 = vst.msk [vmem:[#allocation2] sm:$0xff] %vm56_vm2, %v91_v30  ;;  %v111_v34 = vsub.f32 %v105_v31, %v109_v32 }
 0x166   :  { %v114_v35 = vadd.f32 %v112_v33, %v111_v34 }
 0x168   :  { %115 = vst.msk [vmem:[#allocation3] sm:$0xff] %vm56_vm2, %v114_v35 }
 0x16b   :  { %v119_v36 = vld [vmem:[#allocation2] sm:$0xff] }
 0x16c   :  { %v120_v37 = vsel %vm56_vm2, %v119_v36, 0.0 }
 0x16d   :  { %121 = vadd.xlane.f32.xlu0 %v120_v37 }
 0x16f   :  { %v130_v38 = vld [vmem:[#allocation3] sm:$0xff] }
 0x170   :  { %v131_v39 = vsel %vm56_vm2, %v130_v38, 0.0 }
 0x171   :  { %132 = vadd.xlane.f32.xlu1 %v131_v39 }
 0x1fa   :  { %v122_v40 = vpop.xlane.xlu0 %121 }
 0x1fb   :  { %v123_v41 = vrot.slane %v122_v40, 4 }
 0x1fd   :  { %v124_v42 = vadd.f32 %v123_v41, %v122_v40 }
 0x1fe   :  { %v133_v43 = vpop.xlane.xlu1 %132 }
 0x1ff   :  { %v125_v44 = vrot.slane %v124_v42, 2  ;;  %v134_v45 = vrot.slane %v133_v43, 4 }
 0x201   :  { %v135_v46 = vadd.f32 %v134_v45, %v133_v43  ;;  %v126_v47 = vadd.f32 %v125_v44, %v124_v42 }
 0x203   :  { %v136_v48 = vrot.slane %v135_v46, 2  ;;  %v127_v49 = vrot.slane %v126_v47, 1 }
 0x205   :  { %v137_v50 = vadd.f32 %v136_v48, %v135_v46  ;;  %v128_v51 = vadd.f32 %v127_v49, %v126_v47 }
 0x207   :  { %171 = vpush %v128_v51  ;;  %v138_v52 = vrot.slane %v137_v50, 1 }
 0x209   :  { %v139_v53 = vadd.f32 %v138_v52, %v137_v50 }
 0x20b   :  { %173 = vpush %v139_v53 }
 0x238   :  { %s172_s1 = spop %171 }
 0x239   :  { %v148_v55 = vstv %s172_s1 }
 0x23c   :  { %s174_s6 = spop %173 }
 0x23d   :  { %v146_v54 = vstv %s174_s6 }
 0x23e   :  { %v147_v56 = vsel %vm145_vm6, %v146_v54, 0.0 }
 0x23f   :  { %v149_v57 = vsel %vm143_vm7, %v148_v55, %v147_v56 }
 0x240   :  { %150 = vst [vmem:[#allocation11] sm:$0xff] %v149_v57 }
 0x241   :  { %242 = shalt.err (!%p239_p6)
}
 0x242   :  { %s243_s10 = scalar_lea.hbm %s343_s2, 128 }
 0x243   :  { %p244_p7 = scmp.ne.s32.totalorder %s343_s2, %s243_s10  ;;  %p247_p8 = scmp.lt.u32.totalorder %s243_s10, %s343_s2 }
 0x245   :  { %p249_p9 = pnand %p247_p8, %p244_p7 }
 0x247   :  { %252 = shalt.err (!%p249_p9)
}
 0x248   :  { %160 = dma.vmem_to_hbm [thread:$0]  %s158_s5, 128, %s343_s2, [#allocation8]  }
 0x249   :  { %257 = dma.done.wait [#allocation8], 128  }
 0x24a   :  { %258 = vsyncadd [#allocation8], 4294967168 }
 0x24b   :  { %164 = vsyncpa [#allocation7], 1 }
 0x24c   :  { %165 = vsyncpa [#allocation10], 1 }
 0x24d   :  { %166 = vsyncpa [#allocation8], 1 }

</bundles_post_ra>
